<compile_context>
chip_gen: v6e
topology: v6e:2x2x1
jax: 0.10.0
libtpu: 0.0.40
codegen_flags: <defaults>
</compile_context>

<pallas_src>
import functools

import jax
import jax.numpy as jnp
from jax.experimental import pallas as pl
from jax.experimental.pallas import tpu as pltpu


_GRAD_MXU_MIN_D = 64  # below this, VPU grad beats per-node MXU matmuls + relayouts


def _fused_diging_kernel(params_ref,                    # (2,) SMEM: [step_size, threshold]
                         adj_ref, asrc_ref, adst_ref,   # (N,N) 0/1 mask, (1,D), (1,D)
                         A_ref, b_ref, x_ref,           # (N,D,D), (N,D), (N,D)
                         x1_out, comm_out,              # (N,D), (1,1)
                         *, num_layers):
    step = params_ref[0]
    thr = params_ref[1]

    # Whole-problem VMEM residency; gridless call => single-buffered.
    A = A_ref[...]
    b = b_ref[...]
    adj = adj_ref[...]            # binarized 0/1 float mask (done once in the wrapper)
    att_src = asrc_ref[...]       # (1, D)
    att_dst = adst_ref[...]       # (1, D)
    N = adj.shape[0]
    D = b.shape[1]

    # ---- loop-invariant constants, hoisted out of the per-layer body ----
    neg_bias = jnp.where(adj > 0.0, 0.0, jnp.float32(-1e30))      # additive softmax mask
    ri = jax.lax.broadcasted_iota(jnp.int32, (N, N), 0)
    ci = jax.lax.broadcasted_iota(jnp.int32, (N, N), 1)
    offdiag = jnp.where(ri != ci, jnp.float32(1.0), jnp.float32(0.0))

    def grad_of(xv):  # g[n] = 2 * A[n] @ xv[n] + b[n]
        if D >= _GRAD_MXU_MIN_D:
            # Batched MXU contraction (same 'bqd,bkd->bqk' pattern as flash attention):
            # (N,1,Dc) x (N,Dr,Dc) -> (N,1,Dr); avoids the (N,D,D) temp + lane reduces.
            prod = jax.lax.dot_general(
                xv[:, None, :], A,
                dimension_numbers=(((2,), (2,)), ((0,), (0,))),
                preferred_element_type=jnp.float32)               # (N, 1, D)
            mv = prod[:, 0, :]
        else:
            # Tiny D: VPU broadcast-multiply + lane reduce is cheaper than N tiny MXU
            # matmuls plus the (N,1,D)->(N,D) relayout.
            mv = jnp.sum(A * xv[:, None, :], axis=-1)
        return 2.0 * mv + b

    # Initialization: y = grad(A,b,x), u = x, v = 1, x0 = x.
    x0 = x_ref[...]
    g0 = grad_of(x0)

    def layer_body(_, carry):
        u, v, y, g_prev, _x1, comm = carry
        u_in = u - step * y                   # first conv input of this layer

        # ---- GAT-style attention from u_in; shared by the u / y / v aggregations.
        s_src = jax.lax.dot_general(att_src, u_in, (((1,), (1,)), ((), ())),
                                    preferred_element_type=jnp.float32)     # (1, N)
        s_dst = jax.lax.dot_general(u_in, att_dst, (((1,), (1,)), ((), ())),
                                    preferred_element_type=jnp.float32)     # (N, 1)
        e = s_dst + s_src                                                   # (N, N)
        e = jnp.where(e > 0.0, e, 0.2 * e)                                  # LeakyReLU(0.2)
        e = e + neg_bias
        p = jnp.exp(e - jnp.max(e, axis=-1, keepdims=True)) * adj           # masked, unnormalized

        # Fused normalization: alpha > thr  <=>  p > thr * rowsum(p); normalize once.
        row_p = jnp.sum(p, axis=-1, keepdims=True)
        keep = p > thr * row_p
        kept_p = jnp.where(keep, p, 0.0)
        denom = jnp.maximum(jnp.sum(kept_p, axis=-1, keepdims=True), jnp.float32(1e-30))
        alpha = kept_p * (1.0 / denom)

        # comm_cost: kept off-diagonal edges this layer, accumulated on-chip.
        kept_off = jnp.where(keep, offdiag, 0.0)
        cnt = jnp.sum(jnp.sum(kept_off, axis=-1, keepdims=True), axis=0, keepdims=True)
        comm = comm + cnt

        # Push-DIGing updates: three MXU dots sharing alpha (no concat/slice relayouts).
        u_new = jnp.dot(alpha, u_in, preferred_element_type=jnp.float32)    # conv(u - a*y)
        y_agg = jnp.dot(alpha, y, preferred_element_type=jnp.float32)       # conv(y)
        v_new = jnp.dot(alpha, v, preferred_element_type=jnp.float32)       # conv(v)

        x1 = u_new * (1.0 / v_new)            # inv_v * u  (exact divide; approx would drift)
        g1 = grad_of(x1)
        y_new = y_agg + g1 - g_prev           # carried g_prev == grad(x0) exactly
        return (u_new, v_new, y_new, g1, x1, comm)

    init = (x0, jnp.ones((N, 1), jnp.float32), g0, g0, x0,
            jnp.zeros((1, 1), jnp.float32))
    _, _, _, _, x1, comm = jax.lax.fori_loop(0, num_layers, layer_body, init)

    # Single write-back of both outputs -> one host sync for the whole forward.
    x1_out[...] = x1
    comm_out[...] = comm


def push_diging_forward(adj, att_src, att_dst, A, b, x, *, step_size, threshold, num_layers):
    N, D = x.shape
    num_layers = int(num_layers)
    assert num_layers >= 1
    params = jnp.asarray([step_size, threshold], jnp.float32)
    adj_mask = (adj > 0).astype(jnp.float32)   # binarize once; reused in-kernel as 0/1 mask

    # Scoped-VMEM budget from the actual resident footprint (A dominates).  Headroom for
    # compiler temporaries; note v7x has 64 MiB physical VMEM per TensorCore.
    resident = 4 * (N * D * D + 4 * N * N + 8 * N * D + 16 * N + 4096)
    vmem_limit = int(min(96 * 2**20, max(32 * 2**20, 2 * resident + 8 * 2**20)))

    kernel = functools.partial(_fused_diging_kernel, num_layers=num_layers)
    vmem = pltpu.MemorySpace.VMEM
    x1, comm = pl.pallas_call(
        kernel,
        out_shape=(jax.ShapeDtypeStruct((N, D), jnp.float32),
                   jax.ShapeDtypeStruct((1, 1), jnp.float32)),
        in_specs=[
            pl.BlockSpec(memory_space=pltpu.MemorySpace.SMEM),   # params [step, thr]
            pl.BlockSpec(memory_space=vmem),                     # adj 0/1 mask
            pl.BlockSpec(memory_space=vmem),                     # att_src
            pl.BlockSpec(memory_space=vmem),                     # att_dst
            pl.BlockSpec(memory_space=vmem),                     # A  (resident, 1 buffer)
            pl.BlockSpec(memory_space=vmem),                     # b
            pl.BlockSpec(memory_space=vmem),                     # x
        ],
        out_specs=(pl.BlockSpec(memory_space=vmem),              # x1
                   pl.BlockSpec(memory_space=vmem)),             # comm count
        compiler_params=pltpu.CompilerParams(vmem_limit_bytes=vmem_limit),
    )(params, adj_mask,
      att_src.astype(jnp.float32), att_dst.astype(jnp.float32),
      A.astype(jnp.float32), b.astype(jnp.float32), x.astype(jnp.float32))
    return x1, comm


class NetPushDIGingAdapt:
    """Pallas port of Net_Push_DIGing_Adapt.forward (recording/terminal paths omitted)."""

    def __init__(self, dim, step_size, key):
        self.dim = dim
        self.step_size = float(step_size)
        k1, k2 = jax.random.split(key)
        self.att_src = (0.1 * jax.random.normal(k1, (1, dim))).astype(jnp.float32)
        self.att_dst = (0.1 * jax.random.normal(k2, (1, dim))).astype(jnp.float32)

    def __call__(self, A, b, x, adj, num_layers, threshold=0.0):
        x1, comm = push_diging_forward(
            adj, self.att_src, self.att_dst, A, b, x,
            step_size=self.step_size, threshold=float(threshold),
            num_layers=int(num_layers))
        return x1, int(comm[0, 0])    # single host readback for the whole forward


# ----------------------------------------------------------------------------
# Pure-JAX reference (correctness check only)
# ----------------------------------------------------------------------------
def _reference_forward(A, b, x, adj, att_src, att_dst, step_size, num_layers, threshold):
    N = x.shape[0]

    def grad_ref(xx):
        return 2.0 * jnp.einsum("ndk,nk->nd", A, xx) + b

    def conv_alpha(h):
        s_src = h @ att_src[0]
        s_dst = h @ att_dst[0]
        e = s_dst[:, None] + s_src[None, :]
        e = jnp.where(e > 0.0, e, 0.2 * e)
        mask = adj > 0.0
        e = jnp.where(mask, e, -1e30)
        p = jnp.exp(e - e.max(-1, keepdims=True)) * jnp.where(mask, 1.0, 0.0)
        alpha = p / p.sum(-1, keepdims=True)
        kept = jnp.where(alpha > threshold, alpha, 0.0)
        return kept / jnp.maximum(kept.sum(-1, keepdims=True), 1e-30), alpha

    y = grad_ref(x)
    u = x
    v = jnp.ones((N, 1), jnp.float32)
    x0 = x
    x1 = x0
    comm = 0
    off_diag = 1.0 - jnp.eye(N, dtype=jnp.float32)
    for _ in range(num_layers):
        u_in = u - step_size * y
        alpha_n, alpha_raw = conv_alpha(u_in)
        u = alpha_n @ u_in
        v = alpha_n @ v
        x1 = u / v
        y = alpha_n @ y + grad_ref(x1) - grad_ref(x0)
        x0 = x1
        comm += int(jnp.sum((alpha_raw > threshold) * off_diag))
    return x1, comm


if __name__ == "__main__":
    key = jax.random.PRNGKey(0)
    N, D, num_layers = 8, 16, 3
    step_size, threshold = 0.05, 0.0

    kA, kb, kx, kp = jax.random.split(key, 4)
    M = jax.random.normal(kA, (N, D, D), jnp.float32)
    A = (0.1 / D) * jnp.einsum("nij,nkj->nik", M, M)      # per-node PSD quadratic
    b = jax.random.normal(kb, (N, D), jnp.float32)
    x = jax.random.normal(kx, (N, D), jnp.float32)

    # edge_index of a ring graph -> dense adjacency with self loops (glue code).
    src = jnp.arange(N)
    dst = (src + 1) % N
    edge_index = jnp.stack([jnp.concatenate([src, dst]),
                            jnp.concatenate([dst, src])])
    adj = jnp.zeros((N, N), jnp.float32).at[edge_index[1], edge_index[0]].set(1.0)
    adj = adj + jnp.eye(N, dtype=jnp.float32)

    model = NetPushDIGingAdapt(D, step_size, kp)
    x1, comm_cost = model(A, b, x, adj, num_layers, threshold=threshold)
    x1 = jax.block_until_ready(x1)

    x1_ref, comm_ref = _reference_forward(
        A, b, x, adj, model.att_src, model.att_dst, step_size, num_layers, threshold)

    assert x1.shape == (N, D)
    assert jnp.allclose(x1, x1_ref, rtol=1e-4, atol=1e-4), (x1, x1_ref)
    assert comm_cost == comm_ref, (comm_cost, comm_ref)
    print("KERNEL_OK")
</pallas_src>

<mosaic_0001>
module attributes {stable_mosaic.version = 11 : i64} {
  func.func @_fused_diging_kernel(%arg0: memref<2xf32, #tpu.memory_space<smem>>, %arg1: memref<8x8xf32, #tpu.memory_space<vmem>>, %arg2: memref<1x16xf32, #tpu.memory_space<vmem>>, %arg3: memref<1x16xf32, #tpu.memory_space<vmem>>, %arg4: memref<8x16x16xf32, #tpu.memory_space<vmem>>, %arg5: memref<8x16xf32, #tpu.memory_space<vmem>>, %arg6: memref<8x16xf32, #tpu.memory_space<vmem>>, %arg7: memref<8x16xf32, #tpu.memory_space<vmem>>, %arg8: memref<1x1xf32, #tpu.memory_space<vmem>>) attributes {dimension_semantics = [], scalar_prefetch = 0 : i64, scratch_operands = 0 : i64, tpu.core_type = #tpu.core_type<tc>} {
    %c0 = arith.constant 0 : index
    %0 = memref.load %arg0[%c0] : memref<2xf32, #tpu.memory_space<smem>>
    %c1 = arith.constant 1 : index
    %1 = memref.load %arg0[%c1] : memref<2xf32, #tpu.memory_space<smem>>
    %c0_0 = arith.constant 0 : index
    %c0_1 = arith.constant 0 : index
    %c0_2 = arith.constant 0 : index
    %2 = vector.load %arg4[%c0_0, %c0_1, %c0_2] : memref<8x16x16xf32, #tpu.memory_space<vmem>>, vector<8x16x16xf32>
    %c0_3 = arith.constant 0 : index
    %c0_4 = arith.constant 0 : index
    %3 = vector.load %arg5[%c0_3, %c0_4] : memref<8x16xf32, #tpu.memory_space<vmem>>, vector<8x16xf32>
    %c0_5 = arith.constant 0 : index
    %c0_6 = arith.constant 0 : index
    %4 = vector.load %arg1[%c0_5, %c0_6] : memref<8x8xf32, #tpu.memory_space<vmem>>, vector<8x8xf32>
    %c0_7 = arith.constant 0 : index
    %c0_8 = arith.constant 0 : index
    %5 = vector.load %arg2[%c0_7, %c0_8] : memref<1x16xf32, #tpu.memory_space<vmem>>, vector<1x16xf32>
    %c0_9 = arith.constant 0 : index
    %c0_10 = arith.constant 0 : index
    %6 = vector.load %arg3[%c0_9, %c0_10] : memref<1x16xf32, #tpu.memory_space<vmem>>, vector<1x16xf32>
    %cst = arith.constant 0.000000e+00 : f32
    %7 = vector.broadcast %cst : f32 to vector<8x8xf32>
    %8 = arith.cmpf ogt, %4, %7 : vector<8x8xf32>
    %cst_11 = arith.constant 0.000000e+00 : f32
    %cst_12 = arith.constant -1.000000e+30 : f32
    %9 = vector.broadcast %cst_11 : f32 to vector<8x8xf32>
    %10 = vector.broadcast %cst_12 : f32 to vector<8x8xf32>
    %11 = arith.select %8, %9, %10 : vector<8x8xi1>, vector<8x8xf32>
    %12 = tpu.iota {dimensions = array<i32: 0>} : vector<8x8xi32>
    %13 = tpu.iota {dimensions = array<i32: 1>} : vector<8x8xi32>
    %14 = arith.cmpi ne, %12, %13 : vector<8x8xi32>
    %cst_13 = arith.constant 1.000000e+00 : f32
    %cst_14 = arith.constant 0.000000e+00 : f32
    %15 = vector.broadcast %cst_13 : f32 to vector<8x8xf32>
    %16 = vector.broadcast %cst_14 : f32 to vector<8x8xf32>
    %17 = arith.select %14, %15, %16 : vector<8x8xi1>, vector<8x8xf32>
    %c0_15 = arith.constant 0 : index
    %c0_16 = arith.constant 0 : index
    %18 = vector.load %arg6[%c0_15, %c0_16] : memref<8x16xf32, #tpu.memory_space<vmem>>, vector<8x16xf32>
    %19 = vector.shape_cast %18 : vector<8x16xf32> to vector<8x1x16xf32>
    %20 = vector.broadcast %19 : vector<8x1x16xf32> to vector<8x16x16xf32>
    %21 = arith.mulf %2, %20 : vector<8x16x16xf32>
    %cst_17 = arith.constant dense<0.000000e+00> : vector<8x16xf32>
    %22 = vector.multi_reduction <add>, %21, %cst_17 [2] : vector<8x16x16xf32> to vector<8x16xf32>
    %cst_18 = arith.constant 2.000000e+00 : f32
    %23 = vector.broadcast %cst_18 : f32 to vector<8x16xf32>
    %24 = arith.mulf %23, %22 : vector<8x16xf32>
    %25 = arith.addf %24, %3 : vector<8x16xf32>
    %cst_19 = arith.constant 1.000000e+00 : f32
    %26 = vector.broadcast %cst_19 : f32 to vector<8x1xf32>
    %cst_20 = arith.constant 0.000000e+00 : f32
    %27 = vector.broadcast %cst_20 : f32 to vector<1x1xf32>
    %c0_i32 = arith.constant 0 : i32
    %c3_i32 = arith.constant 3 : i32
    %28 = arith.addi %c0_i32, %c3_i32 : i32
    %c1_i32 = arith.constant 1 : i32
    %29:6 = scf.for %arg9 = %c0_i32 to %28 step %c1_i32 iter_args(%arg10 = %18, %arg11 = %26, %arg12 = %25, %arg13 = %25, %arg14 = %18, %arg15 = %27) -> (vector<8x16xf32>, vector<8x1xf32>, vector<8x16xf32>, vector<8x16xf32>, vector<8x16xf32>, vector<1x1xf32>)  : i32 {
      %32 = vector.broadcast %0 : f32 to vector<8x16xf32>
      %33 = arith.mulf %32, %arg12 : vector<8x16xf32>
      %34 = arith.subf %arg10, %33 : vector<8x16xf32>
      %cst_25 = arith.constant dense<0.000000e+00> : vector<1x8xf32>
      %35 = tpu.matmul %5, %34, %cst_25 {dimension_numbers = #tpu.dot_dimension_numbers<[1], [1], [0], [0], [0, 0, 1, 0], [], []>} : vector<1x16xf32>, vector<8x16xf32>, vector<1x8xf32> -> vector<1x8xf32>
      %cst_26 = arith.constant dense<0.000000e+00> : vector<8x1xf32>
      %36 = tpu.matmul %34, %6, %cst_26 {dimension_numbers = #tpu.dot_dimension_numbers<[1], [1], [0], [0], [0, 0, 1, 0], [], []>} : vector<8x16xf32>, vector<1x16xf32>, vector<8x1xf32> -> vector<8x1xf32>
      %37 = vector.broadcast %36 : vector<8x1xf32> to vector<8x8xf32>
      %38 = vector.broadcast %35 : vector<1x8xf32> to vector<8x8xf32>
      %39 = arith.addf %37, %38 : vector<8x8xf32>
      %cst_27 = arith.constant 0.000000e+00 : f32
      %40 = vector.broadcast %cst_27 : f32 to vector<8x8xf32>
      %41 = arith.cmpf ogt, %39, %40 : vector<8x8xf32>
      %cst_28 = arith.constant 2.000000e-01 : f32
      %42 = vector.broadcast %cst_28 : f32 to vector<8x8xf32>
      %43 = arith.mulf %42, %39 : vector<8x8xf32>
      %44 = arith.select %41, %39, %43 : vector<8x8xi1>, vector<8x8xf32>
      %45 = arith.addf %44, %11 : vector<8x8xf32>
      %cst_29 = arith.constant dense<0xFF800000> : vector<8xf32>
      %46 = vector.multi_reduction <maximumf>, %45, %cst_29 [1] : vector<8x8xf32> to vector<8xf32>
      %47 = vector.shape_cast %46 : vector<8xf32> to vector<8x1xf32>
      %48 = vector.broadcast %47 : vector<8x1xf32> to vector<8x8xf32>
      %49 = arith.subf %45, %48 : vector<8x8xf32>
      %50 = math.exp %49 : vector<8x8xf32>
      %51 = arith.mulf %50, %4 : vector<8x8xf32>
      %cst_30 = arith.constant dense<0.000000e+00> : vector<8xf32>
      %52 = vector.multi_reduction <add>, %51, %cst_30 [1] : vector<8x8xf32> to vector<8xf32>
      %53 = vector.shape_cast %52 : vector<8xf32> to vector<8x1xf32>
      %54 = vector.broadcast %1 : f32 to vector<8x1xf32>
      %55 = arith.mulf %54, %53 : vector<8x1xf32>
      %56 = vector.broadcast %55 : vector<8x1xf32> to vector<8x8xf32>
      %57 = arith.cmpf ogt, %51, %56 : vector<8x8xf32>
      %cst_31 = arith.constant 0.000000e+00 : f32
      %58 = vector.broadcast %cst_31 : f32 to vector<8x8xf32>
      %59 = arith.select %57, %51, %58 : vector<8x8xi1>, vector<8x8xf32>
      %cst_32 = arith.constant dense<0.000000e+00> : vector<8xf32>
      %60 = vector.multi_reduction <add>, %59, %cst_32 [1] : vector<8x8xf32> to vector<8xf32>
      %61 = vector.shape_cast %60 : vector<8xf32> to vector<8x1xf32>
      %cst_33 = arith.constant 1.000000e-30 : f32
      %62 = vector.broadcast %cst_33 : f32 to vector<8x1xf32>
      %63 = arith.maximumf %61, %62 : vector<8x1xf32>
      %cst_34 = arith.constant 1.000000e+00 : f32
      %64 = vector.broadcast %cst_34 : f32 to vector<8x1xf32>
      %65 = arith.divf %64, %63 : vector<8x1xf32>
      %66 = vector.broadcast %65 : vector<8x1xf32> to vector<8x8xf32>
      %67 = arith.mulf %59, %66 : vector<8x8xf32>
      %cst_35 = arith.constant 0.000000e+00 : f32
      %68 = vector.broadcast %cst_35 : f32 to vector<8x8xf32>
      %69 = arith.select %57, %17, %68 : vector<8x8xi1>, vector<8x8xf32>
      %cst_36 = arith.constant dense<0.000000e+00> : vector<8xf32>
      %70 = vector.multi_reduction <add>, %69, %cst_36 [1] : vector<8x8xf32> to vector<8xf32>
      %71 = vector.shape_cast %70 : vector<8xf32> to vector<8x1xf32>
      %cst_37 = arith.constant dense<0.000000e+00> : vector<1xf32>
      %72 = vector.multi_reduction <add>, %71, %cst_37 [0] : vector<8x1xf32> to vector<1xf32>
      %73 = vector.shape_cast %72 : vector<1xf32> to vector<1x1xf32>
      %74 = arith.addf %arg15, %73 : vector<1x1xf32>
      %cst_38 = arith.constant dense<0.000000e+00> : vector<8x16xf32>
      %75 = tpu.matmul %67, %34, %cst_38 {dimension_numbers = #tpu.dot_dimension_numbers<[1], [0], [0], [1], [0, 0, 1, 1], [], []>} : vector<8x8xf32>, vector<8x16xf32>, vector<8x16xf32> -> vector<8x16xf32>
      %cst_39 = arith.constant dense<0.000000e+00> : vector<8x16xf32>
      %76 = tpu.matmul %67, %arg12, %cst_39 {dimension_numbers = #tpu.dot_dimension_numbers<[1], [0], [0], [1], [0, 0, 1, 1], [], []>} : vector<8x8xf32>, vector<8x16xf32>, vector<8x16xf32> -> vector<8x16xf32>
      %cst_40 = arith.constant dense<0.000000e+00> : vector<8x1xf32>
      %77 = tpu.matmul %67, %arg11, %cst_40 {dimension_numbers = #tpu.dot_dimension_numbers<[1], [0], [0], [1], [0, 0, 1, 1], [], []>} : vector<8x8xf32>, vector<8x1xf32>, vector<8x1xf32> -> vector<8x1xf32>
      %cst_41 = arith.constant 1.000000e+00 : f32
      %78 = vector.broadcast %cst_41 : f32 to vector<8x1xf32>
      %79 = arith.divf %78, %77 : vector<8x1xf32>
      %80 = vector.broadcast %79 : vector<8x1xf32> to vector<8x16xf32>
      %81 = arith.mulf %75, %80 : vector<8x16xf32>
      %82 = vector.shape_cast %81 : vector<8x16xf32> to vector<8x1x16xf32>
      %83 = vector.broadcast %82 : vector<8x1x16xf32> to vector<8x16x16xf32>
      %84 = arith.mulf %2, %83 : vector<8x16x16xf32>
      %cst_42 = arith.constant dense<0.000000e+00> : vector<8x16xf32>
      %85 = vector.multi_reduction <add>, %84, %cst_42 [2] : vector<8x16x16xf32> to vector<8x16xf32>
      %cst_43 = arith.constant 2.000000e+00 : f32
      %86 = vector.broadcast %cst_43 : f32 to vector<8x16xf32>
      %87 = arith.mulf %86, %85 : vector<8x16xf32>
      %88 = arith.addf %87, %3 : vector<8x16xf32>
      %89 = arith.addf %76, %88 : vector<8x16xf32>
      %90 = arith.subf %89, %arg13 : vector<8x16xf32>
      scf.yield %75, %77, %90, %88, %81, %74 : vector<8x16xf32>, vector<8x1xf32>, vector<8x16xf32>, vector<8x16xf32>, vector<8x16xf32>, vector<1x1xf32>
    }
    %c0_21 = arith.constant 0 : index
    %c0_22 = arith.constant 0 : index
    %30 = vector.load %arg7[%c0_21, %c0_22] : memref<8x16xf32, #tpu.memory_space<vmem>>, vector<8x16xf32>
    tpu.vector_store %arg7[%c0_21, %c0_22], %29#4 {strides = array<i32>} : memref<8x16xf32, #tpu.memory_space<vmem>>, vector<8x16xf32>,
    %c0_23 = arith.constant 0 : index
    %c0_24 = arith.constant 0 : index
    %31 = vector.load %arg8[%c0_23, %c0_24] : memref<1x1xf32, #tpu.memory_space<vmem>>, vector<1x1xf32>
    tpu.vector_store %arg8[%c0_23, %c0_24], %29#5 {strides = array<i32>} : memref<1x1xf32, #tpu.memory_space<vmem>>, vector<1x1xf32>,
    return
  }
}

</mosaic_0001>

<bundles_post_ra>
// kernel: tpu_custom_call.1
= control target key start
LH: loop header
LB: loop body
LE: loop exit
PB: predicated region body
PF: predicated region fallthrough
CT: control target
= control target key end

     0   :  { %14 = vsyncpa [#allocation5], 0  ;;  %s2833_s0 = inlined_call_operand.hbm [shape: f32[2], index: 0, kind: input, shape index: {}]   ;;  %s2834_s1 = inlined_call_operand.hbm [shape: f32[8,8], index: 1, kind: input, shape index: {}]   ;;  %s2835_s2 = inlined_call_operand.vmem [shape: f32[1,16], index: 2, kind: input, shape index: {}]   ;;  %s2836_s3 = inlined_call_operand.hbm [shape: f32[1,16], index: 3, kind: input, shape index: {}]   ;;  %s2837_s4 = inlined_call_operand.hbm [shape: f32[8,16,16], index: 4, kind: input, shape index: {}]   ;;  %s2838_s5 = inlined_call_operand.vmem [shape: f32[8,16], index: 5, kind: input, shape index: {}]   ;;  %s2839_s6 = inlined_call_operand.hbm [shape: f32[8,16], index: 6, kind: input, shape index: {}]   ;;  %s2840_s7 = inlined_call_operand.hbm [shape: f32[8,16], index: 7, kind: output, shape index: {0}]   ;;  %s2841_s8 = inlined_call_operand.hbm [shape: f32[1,1], index: 8, kind: output, shape index: {1}]  }
   0x1   :  { %15 = vsyncpa [#allocation3], 0 }
   0x2   :  { %16 = vsyncpa [#allocation8], 0 }
   0x3   :  { %17 = vsyncpa [#allocation11], 0 }
   0x4   :  { %18 = vsyncpa [#allocation4], 0 }
   0x5   :  { %19 = vsyncpa [#allocation14], 0  ;;  %s2061_s27 = smov [#allocation7]   ;;  %s2062_s29 = smov [#allocation6]  }
   0x6   :  { %s46_s28 = sshll.u32 %s2061_s27, 4  ;;  %s34_s30 = sshll.u32 %s2062_s29, 4  ;;  %s47_s28 = int_to_ptr.vmem [resolvable:$true] %s46_s28  ;;  %s35_s30 = int_to_ptr.vmem [resolvable:$true] %s34_s30 }
   0x7   :  { %s1761_s9 = scalar_lea.vmem %s47_s28, 16  ;;  %s1765_s10 = scalar_lea.vmem %s47_s28, 32 }
   0x8   :  { %p1762_p0 = scmp.ne.s32.totalorder %s47_s28, %s1761_s9  ;;  %p1766_p1 = scmp.lt.s32.totalorder %s47_s28, %s47_s28 }
   0x9   :  { %p1767_p2 = scmp.lt.s32.totalorder %s1765_s10, %s1761_s9 }
   0xb   :  { %p1768_p3 = por %p1767_p2, %p1766_p1 }
   0xd   :  { %p1769_p4 = pnand %p1768_p3, %p1762_p0 }
   0xf   :  { %1772 = shalt.err (!%p1769_p4)
}
  0x10   :  { %49 = dma.hbm_to_vmem [thread:$0]  %s2836_s3, 16, %s47_s28, [#allocation8]  }
  0x11   :  { %s2063_s13 = smov [#allocation2]   ;;  %s1789_s16 = scalar_lea.vmem %s35_s30, 128 }
  0x12   :  { %27 = dma.hbm_to_smem %s2833_s0, 16, %s2063_s13, [#allocation5]  }
  0x13   :  { %p1790_p5 = scmp.ne.s32.totalorder %s35_s30, %s1789_s16  ;;  %p1794_p6 = scmp.lt.s32.totalorder %s35_s30, %s35_s30 }
  0x14   :  { %p1795_p7 = scmp.lt.s32.totalorder %s1789_s16, %s1789_s16 }
  0x16   :  { %p1796_p8 = por %p1795_p7, %p1794_p6 }
  0x18   :  { %p1797_p9 = pnand %p1796_p8, %p1790_p5 }
  0x1a   :  { %1800 = shalt.err (!%p1797_p9)
}
  0x1b   :  { %37 = dma.hbm_to_vmem [thread:$0]  %s2834_s1, 128, %s35_s30, [#allocation3]  }
  0x1c   :  { %s2064_s19 = smov [#allocation9]  }
  0x1d   :  { %s55_s20 = sshll.u32 %s2064_s19, 4  ;;  %s56_s20 = int_to_ptr.vmem [resolvable:$true] %s55_s20 }
  0x1e   :  { %s1809_s3 = scalar_lea.vmem %s56_s20, 2048  ;;  %p1814_p11 = scmp.lt.s32.totalorder %s56_s20, %s56_s20 }
  0x1f   :  { %p1810_p10 = scmp.ne.s32.totalorder %s56_s20, %s1809_s3  ;;  %p1815_p12 = scmp.lt.s32.totalorder %s1809_s3, %s1809_s3 }
  0x21   :  { %p1816_p13 = por %p1815_p12, %p1814_p11 }
  0x23   :  { %p1817_p0 = pnand %p1816_p13, %p1810_p10 }
  0x25   :  { %1820 = shalt.err (!%p1817_p0)
}
  0x26   :  { %s2065_s0 = smov 128   ;;  %s2066_s21 = smov 8  }
  0x27   :  { %61 = dma.hbm_to_vmem [thread:$0]  %s2837_s4, 2048, %s56_s20, [#allocation8], %s2065_s0, %s2065_s0, %s2066_s21  }
  0x28   :  { %s2067_s24 = smov [#allocation10]  }
  0x29   :  { %s70_s25 = sshll.u32 %s2067_s24, 4  ;;  %s71_s25 = int_to_ptr.vmem [resolvable:$true] %s70_s25 }
  0x2a   :  { %s1829_s1 = scalar_lea.vmem %s71_s25, 128  ;;  %p1834_p2 = scmp.lt.s32.totalorder %s71_s25, %s71_s25 }
  0x2b   :  { %p1830_p1 = scmp.ne.s32.totalorder %s71_s25, %s1829_s1  ;;  %p1835_p3 = scmp.lt.s32.totalorder %s1829_s1, %s1829_s1 }
  0x2d   :  { %p1836_p4 = por %p1835_p3, %p1834_p2 }
  0x2f   :  { %p1837_p5 = pnand %p1836_p4, %p1830_p1 }
  0x31   :  { %1840 = shalt.err (!%p1837_p5)
}
  0x32   :  { %73 = dma.hbm_to_vmem [thread:$0]  %s2839_s6, 128, %s71_s25, [#allocation11]  }
  0x33   :  { %1965 = dma.done.wait [#allocation5], 16  }
  0x34   :  { %1966 = vsyncadd [#allocation5], 4294967280 }
  0x35   :  { %1967 = dma.done.wait [#allocation3], 128  }
  0x36   :  { %1968 = vsyncadd [#allocation3], 4294967168 }
  0x37   :  { %1969 = dma.done.wait [#allocation8], 2064  }
  0x38   :  { %1970 = vsyncadd [#allocation8], 4294965232 }
  0x39   :  { %1971 = dma.done.wait [#allocation11], 128  }
  0x3a   :  { %1972 = vsyncadd [#allocation11], 4294967168 }
  0x3b   :  { %89 = sfence }
  0x3c   :  { %v114_v0 = vlaneseq  ;;  %v2137_v1 = vld [vmem:[#allocation10] sm:$0xff]   ;;  %v2068_v2 = vmov 1966171168   ;;  %v2155_v14 = vld [vmem:[#allocation9 + $0x48] sm:$0xff]  ;;  %vm227_vm0 = vcmask 130048   ;;  %v2164_v20 = vld [vmem:[#allocation9 + $0x10] sm:$0xff] }
  0x3d   :  { %v124_v3 = vunpack.c.l.s4 %v2068_v2  ;;  %v122_v5 = vcombine.high %v2137_v1, %v2137_v1  ;;  %2869 = vst [vmem:[#allocation23_spill] sm:$0xff] %v2155_v14  ;;  %v2157_v15 = vld [vmem:[#allocation9] sm:$0xff]  ;;  %v2159_v16 = vld [vmem:[#allocation9 + $0x8] sm:$0xff]  ;;  %v2172_v28 = vld [vmem:[#allocation9 + $0x18] sm:$0xff]  ;;  %s2355_s30 = sld [smem:[#allocation2 + $0x1]]  ;;  %vm486_vm3 = vcmask 130112  }
  0x3e   :  { %v2140_v4 = vshrl.u32 %v114_v0, 7  ;;  %2870 = vst [vmem:[#allocation24_spill] sm:$0xff] %v2157_v15  ;;  %2871 = vst [vmem:[#allocation25_spill] sm:$0xff] %v2159_v16  ;;  %v2170_v27 = vld [vmem:[#allocation9 + $0x40] sm:$0xff]  ;;  %v2183_v38 = vld [vmem:[#allocation9 + $0x28] sm:$0xff]  ;;  %vm551_vm4 = vcmask 1041409  }
  0x3f   :  { %v125_v6 = vunpack.c.0.s8 %v124_v3  ;;  %v2185_v39 = vld [vmem:[#allocation9 + $0x20] sm:$0xff]  ;;  %v2192_v46 = vld [vmem:[#allocation9 + $0x58] sm:$0xff]  ;;  %v2194_v47 = vld [vmem:[#allocation9 + $0x50] sm:$0xff]  ;;  %vm553_vm5 = vcmask 1042434   ;;  %vm555_vm6 = vcmask 1043459   ;;  %vm557_vm7 = vcmask 1044484  }
  0x40   :  { %v2149_v9 = vsub.s32 0, %v2140_v4  ;;  %v2201_v54 = vld [vmem:[#allocation9 + $0x38] sm:$0xff]  ;;  %v2203_v55 = vld [vmem:[#allocation9 + $0x30] sm:$0xff]  ;;  %v2210_v61 = vld [vmem:[#allocation9 + $0x68] sm:$0xff]  ;;  %vm559_vm8 = vcmask 1045509   ;;  %vm561_vm9 = vcmask 1046534  }
  0x41   :  { %v2145_v7 = vsub.s32 %v125_v6, %v2140_v4  ;;  %v2212_v63 = vld [vmem:[#allocation9 + $0x60] sm:$0xff]  ;;  %vm563_vm10 = vcmask 1047559  }
  0x42   :  { %2868 = vst [vmem:[#allocation22_spill] sm:$0xff] %v2149_v9 }
  0x43   :  { %2867 = vst [vmem:[#allocation21_spill] sm:$0xff] %v2145_v7  ;;  %v136_v8 = vrot.slane %v122_v5, %v2145_v7  ;;  %v129_v10 = vrot.slane %v2137_v1, %v2145_v7 }
  0x45   :  { %v152_v11 = vrot.slane %v136_v8, %v2145_v7  ;;  %v145_v12 = vrot.slane %v129_v10, %v2145_v7  ;;  %v137_v13 = vcombine.high %v129_v10, %v129_v10  ;;  %v138_v22 = vcombine.high %v136_v8, %v136_v8  ;;  %v2219_v10 = vld [vmem:[#allocation9 + $0x78] sm:$0xff] }
  0x46   :  { %2872 = vst [vmem:[#allocation26_spill] sm:$0xff] %v2219_v10 }
  0x47   :  { %v190_v17 = vrot.slane %v152_v11, %v2149_v9  ;;  %v174_v18 = vrot.slane %v145_v12, %v2149_v9  ;;  %v159_v19 = vrot.slane %v137_v13, %v2145_v7  ;;  %v167_v21 = vcombine.high %v145_v12, %v145_v12 }
  0x48   :  { %v166_v33 = vrot.slane %v138_v22, %v2145_v7  ;;  %v168_v49 = vcombine.high %v152_v11, %v152_v11  ;;  %v2221_v11 = vld [vmem:[#allocation9 + $0x70] sm:$0xff] }
  0x49   :  { %v220_v23 = vmul.f32 %v190_v17, %v2155_v14  ;;  %v211_v24 = vmul.f32 %v174_v18, %v2157_v15  ;;  %v178_v25 = vrot.slane %v159_v19, %v2149_v9  ;;  %v212_v26 = vmul.f32 %v174_v18, %v2159_v16  ;;  %2873 = vst [vmem:[#allocation27_spill] sm:$0xff] %v2221_v11  ;;  %v108_v22 = vld [vmem:[%s2838_s5] sm:$0xff]  ;;  %s2345_s5 = sld [smem:[#allocation2]] }
  0x4a   :  { %v219_v32 = vmul.f32 %v190_v17, %v2170_v27  ;;  %v182_v37 = vrot.slane %v167_v21, %v2149_v9  ;;  %v194_v40 = vrot.slane %v166_v33, %v2149_v9  ;;  %v169_v41 = vcombine.high %v159_v19, %v159_v19 }
  0x4b   :  { %v255_v29 = vsel %vm227_vm0, %v220_v23, 0.0  ;;  %v228_v30 = vsel %vm227_vm0, %v211_v24, 0.0  ;;  %v213_v31 = vmul.f32 %v178_v25, %v2164_v20  ;;  %v231_v35 = vsel %vm227_vm0, %v212_v26, 0.0 }
  0x4c   :  { %256 = vadd.xlane.f32.xlu1 %v255_v29  ;;  %229 = vadd.xlane.f32.xlu0 %v228_v30  ;;  %v214_v36 = vmul.f32 %v178_v25, %v2172_v28  ;;  %v252_v43 = vsel %vm227_vm0, %v219_v32, 0.0  ;;  %v216_v44 = vmul.f32 %v182_v37, %v2183_v38  ;;  %v215_v45 = vmul.f32 %v182_v37, %v2185_v39 }
  0x4d   :  { %v234_v34 = vsel %vm227_vm0, %v213_v31, 0.0  ;;  %v222_v48 = vmul.f32 %v194_v40, %v2192_v46  ;;  %v221_v52 = vmul.f32 %v194_v40, %v2194_v47  ;;  %v186_v53 = vrot.slane %v169_v41, %v2149_v9 }
  0x4e   :  { %v237_v42 = vsel %vm227_vm0, %v214_v36, 0.0  ;;  %v243_v50 = vsel %vm227_vm0, %v216_v44, 0.0  ;;  %v240_v51 = vsel %vm227_vm0, %v215_v45, 0.0  ;;  %v198_v57 = vrot.slane %v168_v49, %v2149_v9 }
  0x4f   :  { %v261_v56 = vsel %vm227_vm0, %v222_v48, 0.0  ;;  %v258_v58 = vsel %vm227_vm0, %v221_v52, 0.0  ;;  %v218_v59 = vmul.f32 %v186_v53, %v2201_v54  ;;  %v217_v60 = vmul.f32 %v186_v53, %v2203_v55 }
  0x50   :  { %235 = vadd.xlane.f32.xlu1 %v234_v34  ;;  %232 = vadd.xlane.f32.xlu0 %v231_v35  ;;  %v170_v62 = vcombine.high %v166_v33, %v166_v33  ;;  %v224_v2 = vmul.f32 %v198_v57, %v2210_v61  ;;  %v223_v6 = vmul.f32 %v198_v57, %v2212_v63  ;;  %v306_v24 = vsub.s32 1, %v2140_v4 }
  0x51   :  { %v249_v3 = vsel %vm227_vm0, %v218_v59, 0.0  ;;  %v246_v5 = vsel %vm227_vm0, %v217_v60, 0.0  ;;  %v296_v23 = vrot.slane %v108_v22, %v2149_v9  ;;  %v2069_v25 = vmov 0  }
  0x52   :  { %v202_v8 = vrot.slane %v170_v62, %v2149_v9  ;;  %v267_v12 = vsel %vm227_vm0, %v224_v2, 0.0  ;;  %v264_v13 = vsel %vm227_vm0, %v223_v6, 0.0  ;;  %1743 = vset.pattern.permute.xlu1 %v2069_v25  ;;  %1742 = vset.pattern.permute.xlu0 %v2069_v25  ;;  %v307_v26 = vrot.slane %v108_v22, %v306_v24 }
  0x53   :  { %v317_v29 = vsub.s32 2, %v2140_v4  ;;  %v328_v31 = vsub.s32 3, %v2140_v4  ;;  %v339_v33 = vsub.s32 4, %v2140_v4  ;;  %v350_v35 = vsub.s32 5, %v2140_v4 }
  0x54   :  { %238 = vadd.xlane.f32.xlu1 %v237_v42  ;;  %253 = vadd.xlane.f32.xlu0 %v252_v43  ;;  %v226_v17 = vmul.f32 %v202_v8, %v2219_v10  ;;  %v225_v18 = vmul.f32 %v202_v8, %v2221_v11  ;;  %v361_v37 = vsub.s32 6, %v2140_v4  ;;  %v372_v41 = vsub.s32 7, %v2140_v4 }
  0x55   :  { %v318_v30 = vrot.slane %v108_v22, %v317_v29  ;;  %v329_v32 = vrot.slane %v108_v22, %v328_v31  ;;  %v340_v34 = vrot.slane %v108_v22, %v339_v33  ;;  %v351_v36 = vrot.slane %v108_v22, %v350_v35 }
  0x56   :  { %v273_v19 = vsel %vm227_vm0, %v226_v17, 0.0  ;;  %v270_v21 = vsel %vm227_vm0, %v225_v18, 0.0  ;;  %v362_v40 = vrot.slane %v108_v22, %v361_v37  ;;  %v373_v42 = vrot.slane %v108_v22, %v372_v41 }
  0x57   :  { %v2241_v43 = vand.u32 127, %v114_v0  ;;  %v2070_v44 = vmov 0.0  }
  0x58   :  { %244 = vadd.xlane.f32.xlu1 %v243_v50  ;;  %241 = vadd.xlane.f32.xlu0 %v240_v51 }
  0x59   :  { %vm118_vm1 = vcmp.ne.s32.totalorder %v2140_v4, %v2241_v43 }
  0x5a   :  { %v2245_v45 = vsel %vm118_vm1, 1.0, %v2070_v44 }
  0x5c   :  { %262 = vadd.xlane.f32.xlu1 %v261_v56  ;;  %259 = vadd.xlane.f32.xlu0 %v258_v58 }
  0x60   :  { %250 = vadd.xlane.f32.xlu1 %v249_v3  ;;  %247 = vadd.xlane.f32.xlu0 %v246_v5 }
  0x64   :  { %268 = vadd.xlane.f32.xlu1 %v267_v12  ;;  %265 = vadd.xlane.f32.xlu0 %v264_v13 }
  0x68   :  { %274 = vadd.xlane.f32.xlu1 %v273_v19  ;;  %271 = vadd.xlane.f32.xlu0 %v270_v21 }
  0x79   :  { %302 = vbcast.lane.b32.xlu1 %v296_v23, 264 }
  0x7d   :  { %309 = vbcast.lane.b32.xlu1 %v307_v26, 256 }
  0x7e   :  { %298 = vbcast.lane.b32.xlu0 %v296_v23, 256 }
  0x81   :  { %313 = vbcast.lane.b32.xlu1 %v307_v26, 264 }
  0x82   :  { %320 = vbcast.lane.b32.xlu0 %v318_v30, 256 }
  0x85   :  { %324 = vbcast.lane.b32.xlu1 %v318_v30, 264 }
  0x86   :  { %331 = vbcast.lane.b32.xlu0 %v329_v32, 256 }
  0x89   :  { %335 = vbcast.lane.b32.xlu1 %v329_v32, 264 }
  0x8a   :  { %342 = vbcast.lane.b32.xlu0 %v340_v34, 256 }
  0x8d   :  { %346 = vbcast.lane.b32.xlu1 %v340_v34, 264 }
  0x8e   :  { %353 = vbcast.lane.b32.xlu0 %v351_v36, 256 }
  0x91   :  { %357 = vbcast.lane.b32.xlu1 %v351_v36, 264 }
  0x92   :  { %364 = vbcast.lane.b32.xlu0 %v362_v40, 256 }
  0x95   :  { %368 = vbcast.lane.b32.xlu1 %v362_v40, 264 }
  0x96   :  { %375 = vbcast.lane.b32.xlu0 %v373_v42, 256 }
  0x99   :  { %379 = vbcast.lane.b32.xlu1 %v373_v42, 264 }
  0xd5   :  { %v257_v48 = vpop.xlane.xlu1 %256  ;;  %v230_v49 = vpop.xlane.xlu0 %229 }
  0xd6   :  { %v276_v6 = vmul.f32 2.0, %v230_v49  ;;  %v285_v33 = vmul.f32 2.0, %v257_v48 }
  0xd9   :  { %v236_v50 = vpop.xlane.xlu1 %235  ;;  %v233_v51 = vpop.xlane.xlu0 %232 }
  0xda   :  { %v277_v8 = vmul.f32 2.0, %v233_v51  ;;  %v278_v30 = vmul.f32 2.0, %v236_v50 }
  0xdd   :  { %v239_v52 = vpop.xlane.xlu1 %238  ;;  %v254_v53 = vpop.xlane.xlu0 %253 }
  0xde   :  { %v284_v24 = vmul.f32 2.0, %v254_v53  ;;  %v279_v41 = vmul.f32 2.0, %v239_v52 }
  0xe1   :  { %v245_v56 = vpop.xlane.xlu1 %244  ;;  %v242_v57 = vpop.xlane.xlu0 %241 }
  0xe2   :  { %v280_v34 = vmul.f32 2.0, %v242_v57  ;;  %v281_v50 = vmul.f32 2.0, %v245_v56 }
  0xe5   :  { %v263_v58 = vpop.xlane.xlu1 %262  ;;  %v260_v59 = vpop.xlane.xlu0 %259 }
  0xe6   :  { %v286_v42 = vmul.f32 2.0, %v260_v59  ;;  %v287_v59 = vmul.f32 2.0, %v263_v58 }
  0xe9   :  { %v251_v60 = vpop.xlane.xlu1 %250  ;;  %v248_v62 = vpop.xlane.xlu0 %247 }
  0xed   :  { %v269_v0 = vpop.xlane.xlu1 %268  ;;  %v266_v2 = vpop.xlane.xlu0 %265 }
  0xee   :  { %v288_v51 = vmul.f32 2.0, %v266_v2 }
  0xf1   :  { %v275_v3 = vpop.xlane.xlu1 %274  ;;  %v272_v5 = vpop.xlane.xlu0 %271 }
  0xf5   :  { %v2247_v12 = vpop.permute.xlu1 %302  ;;  %v2249_v13 = vpop.permute.xlu0 %298 }
  0xf6   :  { %2874 = vst [vmem:[#allocation28_spill] sm:$0xff] %v2247_v12  ;;  %2875 = vst [vmem:[#allocation29_spill] sm:$0xff] %v2249_v13  ;;  %v2252_v17 = vadd.f32 %v2247_v12, %v277_v8   ;;  %v2255_v18 = vadd.f32 %v2249_v13, %v276_v6   ;;  %v282_v6 = vmul.f32 2.0, %v248_v62 }
  0xf8   :  { %433 = vperm.xlu1 %1743, %v2252_v17   ;;  %430 = vperm.xlu0 %1742, %v2255_v18  }
  0xf9   :  { %v2259_v19 = vpop.permute.xlu1 %309  ;;  %v2261_v21 = vpop.permute.xlu0 %320 }
  0xfa   :  { %2876 = vst [vmem:[#allocation30_spill] sm:$0xff] %v2259_v19  ;;  %2877 = vst [vmem:[#allocation31_spill] sm:$0xff] %v2261_v21  ;;  %v2278_v32 = vadd.f32 %v2259_v19, %v278_v30   ;;  %v2286_v37 = vadd.f32 %v2261_v21, %v280_v34   ;;  %v289_v30 = vmul.f32 2.0, %v269_v0  ;;  %v283_v34 = vmul.f32 2.0, %v251_v60  ;;  %v2350_v60 = vld [vmem:[%s2835_s2] sm:$0x1] }
  0xfb   :  { %s2455_s2 = smov 0  }
  0xfd   :  { %v2263_v22 = vpop.permute.xlu1 %313  ;;  %v2265_v23 = vpop.permute.xlu0 %331 }
  0xfe   :  { %2878 = vst [vmem:[#allocation32_spill] sm:$0xff] %v2263_v22  ;;  %2879 = vst [vmem:[#allocation33_spill] sm:$0xff] %v2265_v23  ;;  %v2294_v44 = vadd.f32 %v2263_v22, %v279_v41   ;;  %v2314_v56 = vadd.f32 %v2265_v23, %v282_v6  }
 0x101   :  { %v2267_v25 = vpop.permute.xlu1 %324  ;;  %v2269_v26 = vpop.permute.xlu0 %342 }
 0x102   :  { %2880 = vst [vmem:[#allocation34_spill] sm:$0xff] %v2267_v25  ;;  %2881 = vst [vmem:[#allocation35_spill] sm:$0xff] %v2269_v26  ;;  %v2272_v29 = vadd.f32 %v2269_v26, %v284_v24   ;;  %v2306_v53 = vadd.f32 %v2267_v25, %v281_v50  }
 0x104   :  { %454 = vperm.xlu1 %1743, %v2272_v29  }
 0x105   :  { %v2275_v31 = vpop.permute.xlu1 %335  ;;  %v2281_v35 = vpop.permute.xlu0 %353 }
 0x106   :  { %2882 = vst [vmem:[#allocation36_spill] sm:$0xff] %v2275_v31  ;;  %2883 = vst [vmem:[#allocation37_spill] sm:$0xff] %v2281_v35  ;;  %v2297_v48 = vadd.f32 %v2281_v35, %v286_v42   ;;  %v2334_v41 = vadd.f32 %v2275_v31, %v283_v34   ;;  %v2339_v42 = vld [vmem:[#allocation6] sm:$0xff] }
 0x107   :  { %vm112_vm2 = vcmp.gt.f32.partialorder %v2339_v42, 0.0 }
 0x108   :  { %436 = vperm.xlu1 %1743, %v2278_v32  }
 0x109   :  { %v2283_v36 = vpop.permute.xlu1 %346  ;;  %v2299_v49 = vpop.permute.xlu0 %364 }
 0x10a   :  { %2884 = vst [vmem:[#allocation38_spill] sm:$0xff] %v2283_v36  ;;  %v2289_v40 = vadd.f32 %v2283_v36, %v285_v33   ;;  %2885 = vst [vmem:[#allocation39_spill] sm:$0xff] %v2299_v49  ;;  %v2309_v57 = vadd.f32 %v2299_v49, %v288_v51   ;;  %v290_v33 = vmul.f32 2.0, %v272_v5  ;;  %v291_v5 = vmul.f32 2.0, %v275_v3  ;;  %v2352_v51 = vld [vmem:[#allocation7] ss:$0 sm:$0xff] }
 0x10b   :  { %v2071_v3 = vmov -1e+30  }
 0x10c   :  { %457 = vperm.xlu0 %1742, %v2289_v40   ;;  %442 = vperm.xlu1 %1743, %v2286_v37  }
 0x10d   :  { %v2303_v52 = vpop.permute.xlu1 %357  ;;  %v2319_v8 = vpop.permute.xlu0 %375 }
 0x10e   :  { %2886 = vst [vmem:[#allocation40_spill] sm:$0xff] %v2303_v52  ;;  %v2317_v2 = vadd.f32 %v2303_v52, %v287_v59   ;;  %2887 = vst [vmem:[#allocation41_spill] sm:$0xff] %v2319_v8  ;;  %v2326_v58 = vadd.f32 %v2319_v8, %v290_v33   ;;  %v2357_v59 = vsel %vm112_vm2, 0.0, %v2071_v3  ;;  %v481_v52 = vadd.s32 4294967288, %v2241_v43 }
 0x10f   :  { %v2365_v3 = vsub.s32 %v2241_v43, %v2140_v4 }
 0x110   :  { %439 = vperm.xlu0 %1742, %v2294_v44   ;;  %460 = vperm.xlu1 %1743, %v2297_v48   ;;  %v2361_v23 = vsub.s32 %v481_v52, %v2140_v4 }
 0x111   :  { %v2321_v24 = vpop.permute.xlu1 %368 }
 0x112   :  { %2888 = vst [vmem:[#allocation42_spill] sm:$0xff] %v2321_v24  ;;  %v2329_v62 = vadd.f32 %v2321_v24, %v289_v30  }
 0x114   :  { %445 = vperm.xlu0 %1742, %v2306_v53   ;;  %466 = vperm.xlu1 %1743, %v2309_v57  }
 0x115   :  { %v2336_v0 = vpop.permute.xlu1 %379 }
 0x116   :  { %2889 = vst [vmem:[#allocation43_spill] sm:$0xff] %v2336_v0  ;;  %v2342_v50 = vadd.f32 %v2336_v0, %v291_v5  }
 0x118   :  { %463 = vperm.xlu0 %1742, %v2317_v2   ;;  %448 = vperm.xlu1 %1743, %v2314_v56  }
 0x11c   :  { %469 = vperm.xlu0 %1742, %v2329_v62   ;;  %472 = vperm.xlu1 %1743, %v2326_v58  }
 0x120   :  { %451 = vperm.xlu0 %1742, %v2334_v41  }
 0x124   :  { %475 = vperm.xlu0 %1742, %v2342_v50  }
 0x173   :  { %v434_v6 = vpop.permute.xlu1 %433  ;;  %v431_v33 = vpop.permute.xlu0 %430 }
 0x174   :  { %v485_v22 = vrot.slane %v434_v6, %v2361_v23  ;;  %v480_v19 = vrot.slane %v431_v33, %v2365_v3 }
 0x17f   :  { %v455_v30 = vpop.permute.xlu1 %454 }
 0x183   :  { %v437_v34 = vpop.permute.xlu1 %436 }
 0x184   :  { %v491_v12 = vrot.slane %v437_v34, %v2365_v3 }
 0x187   :  { %v443_v5 = vpop.permute.xlu1 %442  ;;  %v458_v0 = vpop.permute.xlu0 %457 }
 0x188   :  { %v500_v52 = vrot.slane %v443_v5, %v2365_v3  ;;  %v522_v4 = vrot.slane %v458_v0, %v2361_v23  ;;  %v518_v5 = vrot.slane %v455_v30, %v2365_v3 }
 0x18b   :  { %v461_v8 = vpop.permute.xlu1 %460  ;;  %v440_v24 = vpop.permute.xlu0 %439 }
 0x18c   :  { %v495_v36 = vrot.slane %v440_v24, %v2361_v23  ;;  %v487_v24 = vsel %vm486_vm3, %v485_v22, %v480_v19  ;;  %v523_v22 = vsel %vm486_vm3, %v522_v4, %v518_v5 }
 0x18e   :  { %v496_v13 = vsel %vm486_vm3, %v495_v36, %v491_v12 }
 0x18f   :  { %v446_v49 = vpop.permute.xlu0 %445  ;;  %v467_v31 = vpop.permute.xlu1 %466  ;;  %v552_v12 = vsel %vm551_vm4, %v496_v13, %v487_v24 }
 0x190   :  { %v504_v26 = vrot.slane %v446_v49, %v2361_v23 }
 0x192   :  { %v505_v43 = vsel %vm486_vm3, %v504_v26, %v500_v52  ;;  %v527_v26 = vrot.slane %v461_v8, %v2365_v3 }
 0x193   :  { %v464_v35 = vpop.permute.xlu0 %463  ;;  %v449_v25 = vpop.permute.xlu1 %448  ;;  %v554_v52 = vsel %vm553_vm5, %v505_v43, %v552_v12 }
 0x194   :  { %v509_v6 = vrot.slane %v449_v25, %v2365_v3  ;;  %v531_v33 = vrot.slane %v464_v35, %v2361_v23  ;;  %v536_v25 = vrot.slane %v467_v31, %v2365_v3 }
 0x196   :  { %v532_v13 = vsel %vm486_vm3, %v531_v33, %v527_v26  ;;  %v2450_v33 = vmov 1.0  }
 0x197   :  { %v470_v21 = vpop.permute.xlu0 %469  ;;  %v473_v36 = vpop.permute.xlu1 %472 }
 0x198   :  { %v540_v0 = vrot.slane %v470_v21, %v2361_v23  ;;  %v545_v21 = vrot.slane %v473_v36, %v2365_v3 }
 0x19a   :  { %v541_v43 = vsel %vm486_vm3, %v540_v0, %v536_v25 }
 0x19b   :  { %v452_v49 = vpop.permute.xlu0 %451 }
 0x19c   :  { %v513_v34 = vrot.slane %v452_v49, %v2361_v23 }
 0x19e   :  { %v514_v19 = vsel %vm486_vm3, %v513_v34, %v509_v6  ;;  %v2398_v34 = vmov 0.0  }
 0x19f   :  { %v556_v35 = vsel %vm555_vm6, %v514_v19, %v554_v52  ;;  %v476_v30 = vpop.permute.xlu0 %475 }
 0x1a0   :  { %v558_v49 = vsel %vm557_vm7, %v523_v22, %v556_v35  ;;  %v549_v8 = vrot.slane %v476_v30, %v2361_v23 }
 0x1a1   :  { %v560_v24 = vsel %vm559_vm8, %v532_v13, %v558_v49 }
 0x1a2   :  { %v562_v4 = vsel %vm561_vm9, %v541_v43, %v560_v24  ;;  %v550_v31 = vsel %vm486_vm3, %v549_v8, %v545_v21 }
 0x1a3   :  { %v564_v6 = vsel %vm563_vm10, %v550_v31, %v562_v4  }
 0x1a4 LB: > { %v2890_v9 = vld [vmem:[#allocation22_spill] sm:$0xff]  ;;  %v2891_v7 = vld [vmem:[#allocation21_spill] sm:$0xff]  ;;  %v593_v5 = vstv %s2345_s5  ;;  %v2072_v12 = vmov 0.0   ;;  %vm2073_vm11 = vmmov 0   ;;  %vm691_vm13 = vcmask 64512   ;;  %v2893_v15 = vld [vmem:[#allocation24_spill] sm:$0xff]  ;;  %v1983_v50 = vphi %v2342_v50, %v2916_v50   ;;  %v1979_v34 = vphi %v2398_v34, %v2915_v34   ;;  %s2059_s2 = sphi %s2455_s2, %s571_s2   ;;  %v2055_v1 = vphi %v2137_v1, %v2551_v1   ;;  %v2051_v33 = vphi %v2450_v33, %v2555_v33   ;;  %v2047_v6 = vphi %v564_v6, %v1419_v6   ;;  %v2043_v18 = vphi %v2255_v18, %v2629_v18   ;;  %v2039_v17 = vphi %v2252_v17, %v2633_v17   ;;  %v2035_v32 = vphi %v2278_v32, %v2637_v32   ;;  %v2031_v44 = vphi %v2294_v44, %v2641_v44   ;;  %v2027_v37 = vphi %v2286_v37, %v2645_v37   ;;  %v2023_v53 = vphi %v2306_v53, %v2649_v53   ;;  %v2019_v56 = vphi %v2314_v56, %v2661_v56   ;;  %v2015_v41 = vphi %v2334_v41, %v2920_v41   ;;  %v2011_v29 = vphi %v2272_v29, %v2919_v29   ;;  %v2007_v40 = vphi %v2289_v40, %v2918_v40   ;;  %v2003_v48 = vphi %v2297_v48, %v2665_v48   ;;  %v1999_v2 = vphi %v2317_v2, %v2702_v2   ;;  %v1995_v57 = vphi %v2309_v57, %v2706_v57   ;;  %v1991_v62 = vphi %v2329_v62, %v2710_v62   ;;  %v1987_v58 = vphi %v2326_v58, %v2917_v58  }
 0x1a5   : > { %1538 = vmatprep.subr.mxu0 %v2072_v12  ;;  %1543 = vmatprep.subr.mxu1 %v2072_v12  ;;  %v594_v36 = vmul.f32 %v2047_v6, %v593_v5  ;;  %v702_v5 = vstv %s2355_s30  ;;  %v2894_v16 = vld [vmem:[#allocation25_spill] sm:$0xff]  ;;  %v2895_v14 = vld [vmem:[#allocation23_spill] sm:$0xff]  ;;  %v2897_v10 = vld [vmem:[#allocation26_spill] sm:$0xff]  ;;  %s571_s2 = sadd.s32 1, %s2059_s2  }
 0x1a6   : > { %1540 = vmatprep.mubr.msk.f32.mxu0 %vm2073_vm11, %v2072_v12  ;;  %1545 = vmatprep.mubr.msk.f32.mxu1 %vm2073_vm11, %v2072_v12  ;;  %v2896_v11 = vld [vmem:[#allocation27_spill] sm:$0xff]  ;;  %p2758_p6 = scmp.ge.s32.totalorder %s571_s2, 3  }
 0x1a7   : > { %v595_v0 = vsub.f32 %v2055_v1, %v594_v36  ;;  %vm1421_vm15 = vcmask (%p2758_p6), 0   ;;  %s2075_s10 = smov (%p2758_p6), [#allocation12]   ;;  %s2076_s12 = smov (%p2758_p6), [#allocation13]  }
 0x1a8   :  { %s1429_s11 = sshll.u32 (%p2758_p6), %s2075_s10, 4  ;;  %s1439_s13 = sshll.u32 (%p2758_p6), %s2076_s12, 4  ;;  %s1430_s11 = int_to_ptr.vmem [resolvable:$true] %s1429_s11  ;;  %s1440_s13 = int_to_ptr.vmem [resolvable:$true] %s1439_s13 }
 0x1a9   : > { %1539 = vmatpush3.xpose.msk.msra.mxu0 %vm227_vm0, %v595_v0  ;;  %v678_v26 = vmul.f32 %v2352_v51, %v595_v0  ;;  %1544 = vmatpush3.msra.mxu1 %v595_v0  ;;  %s1841_s14 = scalar_lea.vmem (%p2758_p6), %s1430_s11, 128  ;;  %p1846_p8 = scmp.lt.s32.totalorder (%p2758_p6), %s1430_s11, %s1430_s11 }
 0x1aa   : > { %1553 = vmatprep.subr.mxu0 %v2072_v12  ;;  %1548 = vmatprep.subr.mxu1 %v2072_v12  ;;  %p1842_p7 = scmp.ne.s32.totalorder (%p2758_p6), %s1430_s11, %s1841_s14  ;;  %p1847_p9 = scmp.lt.s32.totalorder (%p2758_p6), %s1841_s14, %s1841_s14 }
 0x1ab   : > { %v679_v52 = vsel %vm227_vm0, %v678_v26, 0.0 }
 0x1ac   : > { %1541 = vmatmul.mubr.msk.f32.vlgmr.msra.gmra.mxu0 %vm227_vm0, %v2350_v60  ;;  %680 = vadd.xlane.f32.xlu0 %v679_v52  ;;  %p1848_p10 = por (%p2758_p6), %p1847_p9, %p1846_p8 }
 0x1ad   : > { %1554 = vmatpush3.msra.mxu0 %v2047_v6  ;;  %1555 = vmatprep.mubr.msk.f32.mxu0 %vm2073_vm11, %v2072_v12 }
 0x1ae   :  { %p1849_p11 = pnand (%p2758_p6), %p1848_p10, %p1842_p7 }
 0x235   : > { %v681_v19 = vpop.xlane.xlu0 %680 }
 0x26c   : > { %v668_v1 = vpop.f32.mrf.mxu0 }
 0x26d   : > { %v685_v22 = vrot.slane %v668_v1, %v2890_v9 }
 0x26e   : > { %v1542_v25 = vpop.f32.mrf.mxu0 }
 0x26f   : > { %v686_v35 = vadd.f32 %v685_v22, %v681_v19 }
 0x271   : > { %v688_v30 = vmul.f32 0.2, %v686_v35  ;;  %vm687_vm12 = vcmp.gt.f32.partialorder %v686_v35, 0.0 }
 0x273   : > { %v689_v13 = vsel %vm687_vm12, %v686_v35, %v688_v30 }
 0x274   : > { %v690_v21 = vadd.f32 %v689_v13, %v2357_v59 }
 0x276   : > { %v692_v49 = vsel %vm691_vm13, %v690_v21, -inf }
 0x277   : > { %693 = vmax.xlane.f32.xlu0 %v692_v49 }
 0x300   : > { %v694_v8 = vpop.xlane.xlu0 %693 }
 0x301   : > { %v695_v43 = vsub.f32 %v690_v21, %v694_v8 }
 0x303   : > { %v696_v24 = vmul.f32 1.442695, %v695_v43 }
 0x305   : > { %1747 = vpow2.f32 %v696_v24 }
 0x312   : > { %v1748_v4 = vpop.eup %1747 }
 0x313   : > { %v698_v31 = vmul.f32 %v1748_v4, %v2339_v42 }
 0x315   : > { %v699_v6 = vsel %vm691_vm13, %v698_v31, 0.0 }
 0x316   : > { %700 = vadd.xlane.f32.xlu1 %v699_v6  ;;  %v2074_v6 = vmov 0  }
 0x317   : > { %1745 = vset.pattern.permute.xlu0 %v2074_v6  ;;  %1746 = vset.pattern.permute.xlu1 %v2074_v6 }
 0x39f   : > { %v701_v36 = vpop.xlane.xlu1 %700 }
 0x3a0   : > { %v703_v0 = vmul.f32 %v702_v5, %v701_v36 }
 0x3a2   : > { %vm704_vm14 = vcmp.gt.f32.partialorder %v698_v31, %v703_v0 }
 0x3a3   : > { %v705_v26 = vsel %vm704_vm14, %v698_v31, 0.0  ;;  %v713_v1 = vsel %vm704_vm14, %v2245_v45, 0.0 }
 0x3a4   : > { %v706_v52 = vsel %vm691_vm13, %v705_v26, 0.0  ;;  %v714_v19 = vsel %vm691_vm13, %v713_v1, 0.0 }
 0x3a5   : > { %707 = vadd.xlane.f32.xlu1 %v706_v52 }
 0x3a9   : > { %715 = vadd.xlane.f32.xlu1 %v714_v19 }
 0x3ba   : > { %1295 = vperm.xlu1 %1746, %v2039_v17  }
 0x42e   : > { %v708_v22 = vpop.xlane.xlu1 %707 }
 0x42f   : > { %v709_v25 = vmax.f32 %v708_v22, 1e-30 }
 0x431   : > { %1749 = vrcp.f32 %v709_v25 }
 0x432   : > { %v716_v35 = vpop.xlane.xlu1 %715 }
 0x433   : > { %v717_v30 = vrot.slane %v716_v35, 4 }
 0x435   : > { %v718_v13 = vadd.f32 %v717_v30, %v716_v35 }
 0x437   : > { %v719_v21 = vrot.slane %v718_v13, 2 }
 0x439   : > { %v720_v49 = vadd.f32 %v719_v21, %v718_v13 }
 0x43b   : > { %v721_v8 = vrot.slane %v720_v49, 1 }
 0x43d   : > { %v722_v43 = vadd.f32 %v721_v8, %v720_v49 }
 0x43e   : > { %v1750_v24 = vpop.eup %1749 }
 0x43f   : > { %v2542_v34 = vadd.f32 %v1979_v34, %v722_v43   ;;  %v712_v31 = vmul.f32 %v1750_v24, %v705_v26 }
 0x441   : > { %v2892_v4 = vmov %v2542_v34  ;;  %1546 = vmatmul.mubr.msk.f32.vlgmr.msra.gmra.mxu1 %vm691_vm13, %v712_v31  ;;  %1556 = vmatmul.mubr.msk.f32.vlgmr.msra.gmra.mxu0 %vm691_vm13, %v712_v31 }
 0x442   : > { %1549 = vmatpush3.msra.mxu1 %v2051_v33  ;;  %1550 = vmatprep.mubr.msk.f32.mxu1 %vm2073_vm11, %v2072_v12  ;;  %1422 = vst.msk [vmem:[#allocation13] sm:$0x1] (%p2758_p6), %vm1421_vm15, %v2892_v4 }
 0x445   : > { %1551 = vmatmul.mubr.msk.f32.vlgmr.msra.gmra.mxu1 %vm691_vm13, %v712_v31 }
 0x501   : > { %v2551_v1 = vpop.f32.mrf.mxu1   ;;  %v2553_v34 = vpop.f32.mrf.mxu0 }
 0x503   : > { %v1547_v5 = vpop.f32.mrf.mxu1  ;;  %v1557_v36 = vpop.f32.mrf.mxu0 }
 0x505   : > { %v2555_v33 = vpop.f32.mrf.mxu1  }
 0x506   : > { %1751 = vrcp.f32 %v2555_v33 }
 0x507   : > { %v1552_v0 = vpop.f32.mrf.mxu1 }
 0x513   : > { %v1752_v26 = vpop.eup %1751 }
 0x514   : > { %871 = vperm.xlu0 %1745, %v1752_v26  }
 0x518   : > { %1292 = vperm.xlu0 %1745, %v2043_v18  }
 0x58f   : > { %v872_v12 = vpop.permute.xlu0 %871 }
 0x590   : > { %v2560_v52 = vmul.f32 %v872_v12, %v2551_v1 }
 0x592   : > { %v876_v17 = vcombine.high %v2560_v52, %v2560_v52  ;;  %v883_v19 = vrot.slane %v2560_v52, %v2891_v7  ;;  %1420 = vst.msk [vmem:[#allocation12] sm:$0xff] (%p2758_p6), %vm227_vm0, %v2560_v52 }
 0x594   : > { %v890_v22 = vrot.slane %v876_v17, %v2891_v7  ;;  %v891_v25 = vcombine.high %v883_v19, %v883_v19  ;;  %v899_v35 = vrot.slane %v883_v19, %v2891_v7 }
 0x596   : > { %v892_v30 = vcombine.high %v890_v22, %v890_v22  ;;  %v928_v13 = vrot.slane %v899_v35, %v2890_v9  ;;  %v913_v18 = vrot.slane %v891_v25, %v2891_v7  ;;  %v921_v26 = vcombine.high %v899_v35, %v899_v35 }
 0x598   : > { %v965_v21 = vmul.f32 %v928_v13, %v2893_v15  ;;  %v2572_v49 = vrot.slane %v892_v30, %v2891_v7  ;;  %v966_v24 = vmul.f32 %v928_v13, %v2894_v16  ;;  %v932_v31 = vrot.slane %v913_v18, %v2890_v9 }
 0x599   : > { %v936_v19 = vrot.slane %v921_v26, %v2890_v9  ;;  %v906_v13 = vrot.slane %v890_v22, %v2891_v7 }
 0x59a   : > { %v981_v8 = vsel %vm227_vm0, %v965_v21, 0.0  ;;  %v948_v43 = vrot.slane %v2572_v49, %v2890_v9  ;;  %v984_v36 = vsel %vm227_vm0, %v966_v24, 0.0  ;;  %v967_v0 = vmul.f32 %v932_v31, %v2164_v20 }
 0x59b   : > { %982 = vadd.xlane.f32.xlu1 %v981_v8  ;;  %v968_v17 = vmul.f32 %v932_v31, %v2172_v28  ;;  %v969_v30 = vmul.f32 %v936_v19, %v2185_v39  ;;  %v970_v35 = vmul.f32 %v936_v19, %v2183_v38  ;;  %v944_v8 = vrot.slane %v906_v13, %v2890_v9  ;;  %v1296_v19 = vpop.permute.xlu1 %1295 }
 0x59c   : > { %v975_v6 = vmul.f32 %v948_v43, %v2194_v47  ;;  %v987_v12 = vsel %vm227_vm0, %v967_v0, 0.0 }
 0x59d   : > { %v990_v25 = vsel %vm227_vm0, %v968_v17, 0.0  ;;  %v993_v21 = vsel %vm227_vm0, %v969_v30, 0.0  ;;  %v996_v24 = vsel %vm227_vm0, %v970_v35, 0.0  ;;  %v973_v31 = vmul.f32 %v944_v8, %v2170_v27 }
 0x59e   : > { %v1011_v5 = vsel %vm227_vm0, %v975_v6, 0.0  ;;  %v923_v6 = vcombine.high %v913_v18, %v913_v18 }
 0x59f   : > { %1012 = vadd.xlane.f32.xlu0 %v1011_v5  ;;  %985 = vadd.xlane.f32.xlu1 %v984_v36  ;;  %v1005_v5 = vsel %vm227_vm0, %v973_v31, 0.0  ;;  %v974_v36 = vmul.f32 %v944_v8, %v2895_v14  ;;  %v2899_v8 = vld [vmem:[#allocation28_spill] sm:$0xff] }
 0x5a0   : > { %v940_v22 = vrot.slane %v923_v6, %v2890_v9  ;;  %v2900_v6 = vld [vmem:[#allocation30_spill] sm:$0xff] }
 0x5a1   : > { %v1008_v0 = vsel %vm227_vm0, %v974_v36, 0.0 }
 0x5a2   : > { %v971_v26 = vmul.f32 %v940_v22, %v2203_v55  ;;  %v972_v18 = vmul.f32 %v940_v22, %v2201_v54  ;;  %v2901_v22 = vld [vmem:[#allocation32_spill] sm:$0xff] }
 0x5a3   : > { %988 = vadd.xlane.f32.xlu1 %v987_v12 }
 0x5a4   : > { %v999_v12 = vsel %vm227_vm0, %v971_v26, 0.0  ;;  %v1002_v17 = vsel %vm227_vm0, %v972_v18, 0.0 }
 0x5a7   : > { %991 = vadd.xlane.f32.xlu1 %v990_v25 }
 0x5ab   : > { %994 = vadd.xlane.f32.xlu1 %v993_v21 }
 0x5af   : > { %997 = vadd.xlane.f32.xlu1 %v996_v24 }
 0x5b3   : > { %1006 = vadd.xlane.f32.xlu1 %v1005_v5 }
 0x5b5   : > { %1298 = vperm.xlu0 %1745, %v2035_v32   ;;  %v922_v32 = vcombine.high %v906_v13, %v906_v13  ;;  %v2898_v13 = vld [vmem:[#allocation29_spill] sm:$0xff] }
 0x5b7   : > { %1009 = vadd.xlane.f32.xlu1 %v1008_v0 }
 0x5b9   : > { %1304 = vperm.xlu0 %1745, %v2027_v37   ;;  %v976_v37 = vmul.f32 %v948_v43, %v2192_v46 }
 0x5bb   : > { %1000 = vadd.xlane.f32.xlu1 %v999_v12  ;;  %v2902_v12 = vld [vmem:[#allocation31_spill] sm:$0xff] }
 0x5bd   : > { %1310 = vperm.xlu0 %1745, %v2019_v56  }
 0x5bf   : > { %1003 = vadd.xlane.f32.xlu1 %v1002_v17 }
 0x5c1   : > { %1316 = vperm.xlu0 %1745, %v2011_v29   ;;  %v952_v29 = vrot.slane %v922_v32, %v2890_v9 }
 0x5c5   : > { %1322 = vperm.xlu0 %1745, %v2003_v48   ;;  %v1014_v48 = vsel %vm227_vm0, %v976_v37, 0.0 }
 0x5c9   : > { %1328 = vperm.xlu0 %1745, %v1995_v57   ;;  %v977_v57 = vmul.f32 %v952_v29, %v2212_v63 }
 0x5d0   : > { %1301 = vperm.xlu1 %1746, %v2031_v44   ;;  %v924_v44 = vcombine.high %v2572_v49, %v2572_v49 }
 0x5d2   : > { %v956_v56 = vrot.slane %v924_v44, %v2890_v9 }
 0x5d4   : > { %1307 = vperm.xlu1 %1746, %v2023_v53   ;;  %v1017_v53 = vsel %vm227_vm0, %v977_v57, 0.0  ;;  %v980_v43 = vmul.f32 %v956_v56, %v2897_v10 }
 0x5d6   : > { %v1026_v49 = vsel %vm227_vm0, %v980_v43, 0.0 }
 0x5d8   : > { %1313 = vperm.xlu1 %1746, %v2015_v41  }
 0x5dc   : > { %1319 = vperm.xlu1 %1746, %v2007_v40   ;;  %v978_v40 = vmul.f32 %v952_v29, %v2210_v61  ;;  %v1293_v29 = vpop.permute.xlu0 %1292 }
 0x5e0   : > { %1325 = vperm.xlu1 %1746, %v1999_v2   ;;  %v1020_v2 = vsel %vm227_vm0, %v978_v40, 0.0 }
 0x5e4   : > { %1331 = vperm.xlu1 %1746, %v1991_v62   ;;  %v979_v62 = vmul.f32 %v956_v56, %v2896_v11 }
 0x5e6   : > { %v1023_v41 = vsel %vm227_vm0, %v979_v62, 0.0  ;;  %v2904_v62 = vld [vmem:[#allocation35_spill] sm:$0xff] }
 0x608   : > { %1015 = vadd.xlane.f32.xlu1 %v1014_v48 }
 0x60c   : > { %1018 = vadd.xlane.f32.xlu1 %v1017_v53  ;;  %v2903_v53 = vld [vmem:[#allocation34_spill] sm:$0xff] }
 0x610   : > { %1021 = vadd.xlane.f32.xlu1 %v1020_v2 }
 0x614   : > { %1024 = vadd.xlane.f32.xlu1 %v1023_v41 }
 0x618   : > { %1027 = vadd.xlane.f32.xlu1 %v1026_v49 }
 0x624   : > { %v983_v25 = vpop.xlane.xlu1 %982 }
 0x625   : > { %v1029_v30 = vmul.f32 2.0, %v983_v25 }
 0x627   : > { %v2629_v18 = vadd.f32 %v1029_v30, %v2898_v13   ;;  %v2905_v30 = vld [vmem:[#allocation38_spill] sm:$0xff] }
 0x628   : > { %v986_v21 = vpop.xlane.xlu1 %985  ;;  %v1013_v40 = vpop.xlane.xlu0 %1012 }
 0x629   : > { %v1030_v35 = vmul.f32 2.0, %v986_v21  ;;  %1078 = vperm.xlu1 %1746, %v2629_v18  }
 0x62b   : > { %v2633_v17 = vadd.f32 %v1030_v35, %v2899_v8  }
 0x62c   : > { %v989_v24 = vpop.xlane.xlu1 %988 }
 0x62d   : > { %v1031_v31 = vmul.f32 2.0, %v989_v24  ;;  %1081 = vperm.xlu0 %1745, %v2633_v17   ;;  %v1039_v24 = vmul.f32 2.0, %v1013_v40  ;;  %v1342_v40 = vrot.slane %v1293_v29, %v2365_v3 }
 0x62f   : > { %v2637_v32 = vadd.f32 %v1031_v31, %v2900_v6   ;;  %v2906_v31 = vld [vmem:[#allocation33_spill] sm:$0xff] }
 0x630   : > { %v992_v5 = vpop.xlane.xlu1 %991  ;;  %v1299_v43 = vpop.permute.xlu0 %1298 }
 0x631   : > { %v1032_v36 = vmul.f32 2.0, %v992_v5  ;;  %1084 = vperm.xlu1 %1746, %v2637_v32  }
 0x633   : > { %v2641_v44 = vadd.f32 %v1032_v36, %v2901_v22   ;;  %v2907_v36 = vld [vmem:[#allocation37_spill] sm:$0xff]  ;;  %v2908_v22 = vld [vmem:[#allocation36_spill] sm:$0xff] }
 0x634   : > { %v995_v0 = vpop.xlane.xlu1 %994  ;;  %v1305_v8 = vpop.permute.xlu0 %1304 }
 0x635   : > { %v1033_v26 = vmul.f32 2.0, %v995_v0  ;;  %1087 = vperm.xlu1 %1746, %v2641_v44  }
 0x637   : > { %v2645_v37 = vadd.f32 %v1033_v26, %v2902_v12  }
 0x638   : > { %v998_v48 = vpop.xlane.xlu1 %997  ;;  %v1311_v26 = vpop.permute.xlu0 %1310 }
 0x639   : > { %v1034_v57 = vmul.f32 2.0, %v998_v48  ;;  %1090 = vperm.xlu1 %1746, %v2645_v37   ;;  %v2665_v48 = vadd.f32 %v1039_v24, %v2907_v36  }
 0x63b   : > { %v2649_v53 = vadd.f32 %v1034_v57, %v2903_v53  }
 0x63c   : > { %v1007_v56 = vpop.xlane.xlu1 %1006  ;;  %v1317_v24 = vpop.permute.xlu0 %1316 }
 0x63d   : > { %v1037_v2 = vmul.f32 2.0, %v1007_v56  ;;  %1093 = vperm.xlu1 %1746, %v2649_v53  }
 0x63f   : > { %v2653_v41 = vadd.f32 %v1037_v2, %v2904_v62   ;;  %v1346_v2 = vrot.slane %v1296_v19, %v2361_v23  ;;  %v1351_v62 = vrot.slane %v1299_v43, %v2365_v3  ;;  %v1369_v19 = vrot.slane %v1311_v26, %v2365_v3 }
 0x640   : > { %v1010_v49 = vpop.xlane.xlu1 %1009 }
 0x641   : > { %v1038_v25 = vmul.f32 2.0, %v1010_v49  ;;  %1102 = vperm.xlu0 %1745, %v2653_v41  }
 0x643   : > { %v2657_v13 = vadd.f32 %v1038_v25, %v2905_v30   ;;  %v1360_v30 = vrot.slane %v1305_v8, %v2365_v3 }
 0x644   : > { %v1001_v21 = vpop.xlane.xlu1 %1000 }
 0x645   : > { %v1035_v35 = vmul.f32 2.0, %v1001_v21  ;;  %1105 = vperm.xlu1 %1746, %v2657_v13  }
 0x647   : > { %v2661_v56 = vadd.f32 %v1035_v35, %v2906_v31   ;;  %v1347_v35 = vsel %vm486_vm3, %v1346_v2, %v1342_v40 }
 0x648   : > { %v1004_v6 = vpop.xlane.xlu1 %1003 }
 0x649   : > { %v1036_v5 = vmul.f32 2.0, %v1004_v6  ;;  %1096 = vperm.xlu0 %1745, %v2661_v56  }
 0x64b   : > { %v2668_v0 = vadd.f32 %v1036_v5, %v2908_v22   ;;  %v1323_v22 = vpop.permute.xlu0 %1322 }
 0x64c   : > { %v1302_v12 = vpop.permute.xlu1 %1301 }
 0x64d   : > { %v1355_v57 = vrot.slane %v1302_v12, %v2361_v23  ;;  %1108 = vperm.xlu0 %1745, %v2665_v48   ;;  %1099 = vperm.xlu1 %1746, %v2668_v0  }
 0x64f   : > { %v1356_v49 = vsel %vm486_vm3, %v1355_v57, %v1351_v62  ;;  %v1378_v57 = vrot.slane %v1317_v24, %v2365_v3 }
 0x650   : > { %v1308_v25 = vpop.permute.xlu1 %1307  ;;  %v1411_v31 = vsel %vm551_vm4, %v1356_v49, %v1347_v35 }
 0x651   : > { %v1364_v21 = vrot.slane %v1308_v25, %v2361_v23  ;;  %v1387_v25 = vrot.slane %v1323_v22, %v2365_v3 }
 0x653   : > { %v1365_v6 = vsel %vm486_vm3, %v1364_v21, %v1360_v30  ;;  %v1329_v30 = vpop.permute.xlu0 %1328 }
 0x654   : > { %v1412_v29 = vsel %vm553_vm5, %v1365_v6, %v1411_v31  ;;  %v1314_v5 = vpop.permute.xlu1 %1313  ;;  %v1396_v6 = vrot.slane %v1329_v30, %v2365_v3  ;;  %v2912_v30 = vld [vmem:[#allocation41_spill] sm:$0xff] }
 0x655   : > { %v1373_v43 = vrot.slane %v1314_v5, %v2361_v23 }
 0x657   : > { %v1374_v36 = vsel %vm486_vm3, %v1373_v43, %v1369_v19 }
 0x658   : > { %v1413_v8 = vsel %vm555_vm6, %v1374_v36, %v1412_v29  ;;  %v1320_v12 = vpop.permute.xlu1 %1319  ;;  %v2909_v36 = vld [vmem:[#allocation40_spill] sm:$0xff] }
 0x659   : > { %v1382_v40 = vrot.slane %v1320_v12, %v2361_v23  ;;  %v2910_v12 = vld [vmem:[#allocation39_spill] sm:$0xff] }
 0x65b   : > { %v1383_v2 = vsel %vm486_vm3, %v1382_v40, %v1378_v57 }
 0x65c   : > { %v1414_v62 = vsel %vm557_vm7, %v1383_v2, %v1413_v8  ;;  %v1326_v49 = vpop.permute.xlu1 %1325 }
 0x65d   : > { %v1391_v26 = vrot.slane %v1326_v49, %v2361_v23  ;;  %v2911_v49 = vld [vmem:[#allocation42_spill] sm:$0xff] }
 0x65f   : > { %v1392_v21 = vsel %vm486_vm3, %v1391_v26, %v1387_v25 }
 0x660   : > { %v1415_v35 = vsel %vm559_vm8, %v1392_v21, %v1414_v62  ;;  %v1332_v31 = vpop.permute.xlu1 %1331 }
 0x661   : > { %v1400_v24 = vrot.slane %v1332_v31, %v2361_v23 }
 0x663   : > { %v1401_v29 = vsel %vm486_vm3, %v1400_v24, %v1396_v6  ;;  %v2913_v6 = vld [vmem:[#allocation43_spill] sm:$0xff] }
 0x664   : > { %v2699_v5 = vsel %vm561_vm9, %v1401_v29, %v1415_v35 }
 0x691   : > { %v1016_v19 = vpop.xlane.xlu1 %1015 }
 0x692   : > { %v1040_v43 = vmul.f32 2.0, %v1016_v19 }
 0x694   : > { %v2702_v2 = vadd.f32 %v1040_v43, %v2909_v36  }
 0x695   : > { %v1019_v22 = vpop.xlane.xlu1 %1018 }
 0x696   : > { %v1041_v8 = vmul.f32 2.0, %v1019_v22  ;;  %1111 = vperm.xlu1 %1746, %v2702_v2  }
 0x698   : > { %v2706_v57 = vadd.f32 %v1041_v8, %v2910_v12  }
 0x699   : > { %v1022_v40 = vpop.xlane.xlu1 %1021 }
 0x69a   : > { %v1042_v62 = vmul.f32 2.0, %v1022_v40  ;;  %1114 = vperm.xlu0 %1745, %v2706_v57  }
 0x69c   : > { %v2710_v62 = vadd.f32 %v1042_v62, %v2911_v49  }
 0x69d   : > { %v1025_v25 = vpop.xlane.xlu1 %1024 }
 0x69e   : > { %v1043_v26 = vmul.f32 2.0, %v1025_v25  ;;  %1117 = vperm.xlu1 %1746, %v2710_v62  }
 0x6a0   : > { %v2714_v21 = vadd.f32 %v1043_v26, %v2912_v30  }
 0x6a1   : > { %v1028_v35 = vpop.xlane.xlu1 %1027 }
 0x6a2   : > { %v1044_v31 = vmul.f32 2.0, %v1028_v35  ;;  %1120 = vperm.xlu0 %1745, %v2714_v21  }
 0x6a4   : > { %v1060_v24 = vadd.f32 %v1044_v31, %v2913_v6  }
 0x6a5   : > { %v1079_v29 = vpop.permute.xlu1 %1078 }
 0x6a6   : > { %1123 = vperm.xlu1 %1746, %v1060_v24   ;;  %1334 = vperm.xlu0 %1745, %v1987_v58   ;;  %v1128_v10 = vrot.slane %v1079_v29, %v2365_v3 }
 0x6a8   : > { %v1082_v22 = vpop.permute.xlu0 %1081 }
 0x6a9   : > { %v1132_v58 = vrot.slane %v1082_v22, %v2361_v23 }
 0x6aa   : > { %1337 = vperm.xlu1 %1746, %v1983_v50  }
 0x6ac   : > { %v1085_v19 = vpop.permute.xlu1 %1084 }
 0x6ad   : > { %v1137_v50 = vrot.slane %v1085_v19, %v2365_v3 }
 0x6b0   : > { %v1088_v43 = vpop.permute.xlu1 %1087 }
 0x6b1   : > { %v1141_v30 = vrot.slane %v1088_v43, %v2361_v23 }
 0x6b3   : > { %v1142_v11 = vsel %vm486_vm3, %v1141_v30, %v1137_v50 }
 0x6b4   : > { %v1091_v36 = vpop.permute.xlu1 %1090 }
 0x6b5   : > { %v1146_v7 = vrot.slane %v1091_v36, %v2365_v3 }
 0x6b8   : > { %v1094_v8 = vpop.permute.xlu1 %1093 }
 0x6b9   : > { %v1150_v31 = vrot.slane %v1094_v8, %v2361_v23  ;;  %v1133_v8 = vsel %vm486_vm3, %v1132_v58, %v1128_v10 }
 0x6bb   : > { %v1151_v43 = vsel %vm486_vm3, %v1150_v31, %v1146_v7 }
 0x6bc   : > { %v1103_v12 = vpop.permute.xlu0 %1102 }
 0x6bd   : > { %v1164_v50 = vrot.slane %v1103_v12, %v2365_v3 }
 0x6c0   : > { %v1106_v40 = vpop.permute.xlu1 %1105 }
 0x6c1   : > { %v1168_v36 = vrot.slane %v1106_v40, %v2361_v23 }
 0x6c4   : > { %v1097_v49 = vpop.permute.xlu0 %1096 }
 0x6c5   : > { %v1155_v14 = vrot.slane %v1097_v49, %v2365_v3 }
 0x6c8   : > { %v1100_v25 = vpop.permute.xlu1 %1099  ;;  %v1109_v26 = vpop.permute.xlu0 %1108 }
 0x6c9   : > { %v1159_v6 = vrot.slane %v1100_v25, %v2361_v23  ;;  %v1197_v25 = vsel %vm551_vm4, %v1142_v11, %v1133_v8  ;;  %v1173_v49 = vrot.slane %v1109_v26, %v2365_v3 }
 0x6ca   : > { %v1198_v30 = vsel %vm553_vm5, %v1151_v43, %v1197_v25 }
 0x6cb   : > { %v1160_v22 = vsel %vm486_vm3, %v1159_v6, %v1155_v14 }
 0x6cc   : > { %v1199_v7 = vsel %vm555_vm6, %v1160_v22, %v1198_v30 }
 0x711   : > { %v1112_v35 = vpop.permute.xlu1 %1111 }
 0x712   : > { %v1177_v19 = vrot.slane %v1112_v35, %v2361_v23  ;;  %v1169_v35 = vsel %vm486_vm3, %v1168_v36, %v1164_v50  ;;  %v2916_v50 = vmov %v1060_v24 }
 0x714   : > { %v1178_v14 = vsel %vm486_vm3, %v1177_v19, %v1173_v49 }
 0x715   : > { %v1115_v9 = vpop.permute.xlu0 %1114 }
 0x716   : > { %v1182_v10 = vrot.slane %v1115_v9, %v2365_v3 }
 0x719   : > { %v1118_v15 = vpop.permute.xlu1 %1117 }
 0x71a   : > { %v1186_v16 = vrot.slane %v1118_v15, %v2361_v23  ;;  %v1200_v15 = vsel %vm557_vm7, %v1169_v35, %v1199_v7 }
 0x71b   : > { %v1201_v26 = vsel %vm559_vm8, %v1178_v14, %v1200_v15 }
 0x71c   : > { %v1187_v11 = vsel %vm486_vm3, %v1186_v16, %v1182_v10 }
 0x71d   : > { %v1121_v29 = vpop.permute.xlu0 %1120  ;;  %v1202_v6 = vsel %vm561_vm9, %v1187_v11, %v1201_v26 }
 0x71e   : > { %v1191_v31 = vrot.slane %v1121_v29, %v2365_v3  ;;  %v2919_v29 = vmov %v2653_v41  ;;  %v2920_v41 = vmov %v2668_v0 }
 0x721   : > { %v1124_v40 = vpop.permute.xlu1 %1123  ;;  %v1335_v12 = vpop.permute.xlu0 %1334 }
 0x722   : > { %v1195_v58 = vrot.slane %v1124_v40, %v2361_v23  ;;  %v1405_v22 = vrot.slane %v1335_v12, %v2365_v3  ;;  %v2918_v40 = vmov %v2657_v13 }
 0x724   : > { %v1196_v9 = vsel %vm486_vm3, %v1195_v58, %v1191_v31  ;;  %v2917_v58 = vmov %v2714_v21 }
 0x725   : > { %v1203_v43 = vsel %vm563_vm10, %v1196_v9, %v1202_v6  ;;  %v1338_v8 = vpop.permute.xlu1 %1337 }
 0x726   : > { %v1409_v16 = vrot.slane %v1338_v8, %v2361_v23  ;;  %v1272_v19 = vadd.f32 %v2553_v34, %v1203_v43  ;;  %v2915_v34 = vmov %v2892_v4  ;;  %570 = sbr.rel (!%p2758_p6) target bundleno = 420 (0x1a4), region = 83 }
 0x728   : > { %v1410_v25 = vsel %vm486_vm3, %v1409_v16, %v1405_v22 }
 0x729   : > { %v1417_v36 = vsel %vm563_vm10, %v1410_v25, %v2699_v5 }
 0x72a   : > { %v1419_v6 = vsub.f32 %v1272_v19, %v1417_v36  }
 0x72b   :  { %1852 = shalt.err (!%p1849_p11)
}
 0x72c   :  { %1432 = dma.vmem_to_hbm [thread:$0]  %s1430_s11, 128, %s2840_s7, [#allocation4]  }
 0x72d   :  { %s1861_s17 = scalar_lea.vmem %s1440_s13, 16  ;;  %s1865_s18 = scalar_lea.vmem %s1440_s13, 32 }
 0x72e   :  { %p1862_p12 = scmp.ne.s32.totalorder %s1440_s13, %s1861_s17  ;;  %p1866_p13 = scmp.lt.s32.totalorder %s1440_s13, %s1440_s13 }
 0x72f   :  { %p1867_p0 = scmp.lt.s32.totalorder %s1865_s18, %s1861_s17 }
 0x731   :  { %p1868_p1 = por %p1867_p0, %p1866_p13 }
 0x733   :  { %p1869_p2 = pnand %p1868_p1, %p1862_p12 }
 0x735   :  { %1872 = shalt.err (!%p1869_p2)
}
 0x736   :  { %1442 = dma.vmem_to_hbm [thread:$0]  %s1440_s13, 16, %s2841_s8, [#allocation14]  }
 0x737   :  { %1973 = dma.done.wait [#allocation4], 128  }
 0x738   :  { %1974 = vsyncadd [#allocation4], 4294967168 }
 0x739   :  { %1975 = dma.done.wait [#allocation14], 16  }
 0x73a   :  { %1976 = vsyncadd [#allocation14], 4294967280 }
 0x73b   :  { %1449 = vsyncpa [#allocation3], 1 }
 0x73c   :  { %1450 = vsyncpa [#allocation8], 1 }
 0x73d   :  { %1451 = vsyncpa [#allocation11], 1 }
 0x73e   :  { %1452 = vsyncpa [#allocation4], 1 }
 0x73f   :  { %1453 = vsyncpa [#allocation14], 1 }
 0x740   :  { %1454 = vsyncpa [#allocation5], 1 }

</bundles_post_ra>
